<compile_context>
chip_gen: v7x
topology: tpu7x:2x2x1
jax: 0.10.0
libtpu: 0.0.40
codegen_flags: <defaults>
</compile_context>

<pallas_src>
import functools
import math

import jax
import jax.numpy as jnp
from jax.experimental import pallas as pl
from jax.experimental.pallas import tpu as pltpu

POS_WEIGHT = 2.13
LANES = 128              # vreg lane width
SUBLANES = 8             # vreg sublane count
MAX_TILE_ROWS = 4096     # (4096,128) f32 = 2 MiB/tile/input
VMEM_LIMIT_BYTES = 32 * 1024 * 1024


def _tensorcores_per_chip():
    """2 on v7x (2 TCs/chip), 1 on v5e/v6e. Conservative on failure."""
    try:
        kind = jax.devices()[0].device_kind.lower()
    except Exception:  # pragma: no cover - defensive
        return 1
    return 2 if ("v7" in kind or "7x" in kind) else 1


def _bce_elementwise_f32(x, y, pos_weight):
    """Numerically stable torch-equivalent per-element loss (in f32)."""
    x = x.astype(jnp.float32)
    y = y.astype(jnp.float32)
    log_weight = 1.0 + (pos_weight - 1.0) * y
    softplus_neg_x = jnp.maximum(-x, 0.0) + jnp.log1p(jnp.exp(-jnp.abs(x)))
    return (1.0 - y) * x + log_weight * softplus_neg_x


def _bce_kernel(x_ref, y_ref, out_ref, *, pos_weight, m_valid, tile_rows,
                steps, needs_mask):
    c = pl.program_id(0)   # TensorCore split (size 1 on single-TC chips)
    i = pl.program_id(1)   # sequential reduction steps

    @pl.when(i == 0)
    def _():
        out_ref[...] = jnp.zeros_like(out_ref)

    loss = _bce_elementwise_f32(x_ref[...], y_ref[...], pos_weight)

    def accumulate(vals):
        # Fold (tile_rows, 128) onto the VMEM-resident (8, 128) accumulator:
        # pure VPU adds, no XLU reduce, no scalar round-trip.
        out_ref[...] += vals.reshape(tile_rows // SUBLANES, SUBLANES,
                                     LANES).sum(axis=0)

    if needs_mask:
        row0 = (c * steps + i) * tile_rows

        # Hot path: block fully inside the valid extent -> no mask work.
        @pl.when(row0 + tile_rows <= m_valid)
        def _():
            accumulate(loss)

        # Cold path: ragged last block and/or clamped overflow block of the
        # 2-way split. Keep the select (NOT multiply-by-mask): rows past the
        # valid extent hold unspecified VMEM contents that may be NaN/Inf.
        @pl.when(row0 + tile_rows > m_valid)
        def _():
            rows = row0 + jax.lax.broadcasted_iota(
                jnp.int32, (tile_rows, LANES), 0)
            accumulate(jnp.where(rows < m_valid, loss, 0.0))
    else:
        accumulate(loss)


def binary_loss_mean(inputs, targets, pos_weight=POS_WEIGHT,
                     max_tile_rows=MAX_TILE_ROWS):
    """BCEWithLogitsLoss(reduction='mean', pos_weight=pos_weight)."""
    assert inputs.shape == targets.shape
    total = math.prod(inputs.shape)

    x_flat = inputs.reshape(-1)
    y_flat = targets.reshape(-1)

    m = total // LANES               # complete 128-lane rows
    if m < SUBLANES:
        # Tiny (<1024 elements) input: a kernel launch is pure overhead.
        return (jnp.sum(_bce_elementwise_f32(x_flat, y_flat, float(pos_weight)))
                / jnp.float32(total))

    main = m * LANES
    tail = total - main              # 0..127 trailing elements

    # Aligned prefix goes through the kernel; the (<128-element) tail is summed
    # in pure JAX below. No concatenate / padding copy of the full tensors.
    x2 = (x_flat[:main] if tail else x_flat).reshape(m, LANES)
    y2 = (y_flat[:main] if tail else y_flat).reshape(m, LANES)

    # Large, sublane-aligned tile; ragged boundary handled by the gated
    # in-kernel row mask (no full-array fallback that could exceed VMEM).
    tm = min(max_tile_rows, (m // SUBLANES) * SUBLANES)
    nb = pl.cdiv(m, tm)                                   # number of row blocks
    nsplit = 2 if (nb >= 2 and _tensorcores_per_chip() >= 2) else 1
    steps = pl.cdiv(nb, nsplit)
    needs_mask = (nsplit * steps * tm) != m

    def in_block(c, i):
        g = c * steps + i
        if nsplit * steps > nb:      # clamp overflow blocks of the split
            g = jnp.minimum(g, nb - 1)
        return (g, 0)

    kernel = functools.partial(
        _bce_kernel, pos_weight=float(pos_weight), m_valid=m,
        tile_rows=tm, steps=steps, needs_mask=needs_mask)

    # core_parallel actually shards the leading axis across the two v7x
    # TensorCores; plain "parallel" does not change codegen, and on single-TC
    # chips we keep a single "arbitrary" reduction axis (nsplit == 1).
    lead_sem = pltpu.CORE_PARALLEL if nsplit > 1 else pltpu.ARBITRARY

    bytes_in = main * (x2.dtype.itemsize + y2.dtype.itemsize)
    partials = pl.pallas_call(
        kernel,
        out_shape=jax.ShapeDtypeStruct((nsplit * SUBLANES, LANES), jnp.float32),
        grid_spec=pltpu.PrefetchScalarGridSpec(
            num_scalar_prefetch=0,
            grid=(nsplit, steps),
            in_specs=[
                pl.BlockSpec((tm, LANES), in_block),
                pl.BlockSpec((tm, LANES), in_block),
            ],
            out_specs=pl.BlockSpec((SUBLANES, LANES), lambda c, i: (c, 0)),
        ),
        compiler_params=pltpu.CompilerParams(
            dimension_semantics=(lead_sem, pltpu.ARBITRARY),
            vmem_limit_bytes=VMEM_LIMIT_BYTES,
        ),
        cost_estimate=pl.CostEstimate(
            flops=10 * main,
            transcendentals=2 * main,
            bytes_accessed=bytes_in + nsplit * SUBLANES * LANES * 4,
        ),
    )(x2, y2)

    # Single cheap cross-lane reduce + mean on a tiny array, outside the kernel.
    # TODO(synk): for >=1e8-element tensors, switch to a compensated (Kahan)
    # cross-step add if agreement tighter than ~1e-5 vs an f32 reference is
    # required.
    loss_sum = jnp.sum(partials)
    if tail:
        loss_sum = loss_sum + jnp.sum(
            _bce_elementwise_f32(x_flat[main:], y_flat[main:],
                                 float(pos_weight)))
    return loss_sum / jnp.float32(total)


class Loss:
    """JAX mirror of the PyTorch `Loss` module (segment BCE-with-logits)."""

    def __init__(self, pos_weight=POS_WEIGHT, cast_targets_to_bf16=False):
        # cast_targets_to_bf16: lossless for hard 0/1 targets and halves the
        # target HBM stream of this bandwidth-bound kernel; leave False to
        # preserve exact semantics for soft (non-binary) targets.
        self.pos_weight = pos_weight
        self.cast_targets_to_bf16 = cast_targets_to_bf16

    def __call__(self, inputs, targets):
        if self.cast_targets_to_bf16:
            targets = targets.astype(jnp.bfloat16)
        return binary_loss_mean(inputs, targets, self.pos_weight)


def _reference(inputs, targets, pos_weight=POS_WEIGHT):
    return jnp.mean(_bce_elementwise_f32(inputs, targets, pos_weight))


if __name__ == "__main__":
    key = jax.random.PRNGKey(0)
    k1, k2 = jax.random.split(key)

    # NCHW logits and binary targets (small shapes)
    B, C, H, W = 2, 4, 16, 16
    inputs = jax.random.normal(k1, (B, C, H, W), dtype=jnp.float32)
    targets = jax.random.bernoulli(k2, 0.5, (B, C, H, W)).astype(jnp.float32)

    ref = _reference(inputs, targets)

    # Default path: f32 logits / f32 targets, exact torch semantics.
    loss_mod = Loss()
    out = loss_mod(inputs, targets)
    jax.block_until_ready(out)
    assert jnp.allclose(out, ref, rtol=1e-5, atol=1e-5), (out, ref)

    # Narrow-dtype path: bf16 targets (lossless for 0/1) to cut HBM traffic.
    out_bf16 = Loss(cast_targets_to_bf16=True)(inputs, targets)
    jax.block_until_ready(out_bf16)
    assert jnp.allclose(out_bf16, ref, rtol=1e-5, atol=1e-5), (out_bf16, ref)

    print("KERNEL_OK")
</pallas_src>

<mosaic_0001>
module attributes {stable_mosaic.version = 11 : i64} {
  func.func @_bce_kernel(%arg0: i32, %arg1: i32, %arg2: memref<16x128xf32, #tpu.memory_space<vmem>>, %arg3: memref<16x128xf32, #tpu.memory_space<vmem>>, %arg4: memref<8x128xf32, #tpu.memory_space<vmem>>) attributes {dimension_semantics = [#tpu.dimension_semantics<arbitrary>, #tpu.dimension_semantics<arbitrary>], iteration_bounds = array<i64: 1, 1>, scalar_prefetch = 0 : i64, scratch_operands = 0 : i64, tpu.core_type = #tpu.core_type<tc>, window_params = [{transform_indices = @transform_0, window_bounds = array<i64: 16, 128>}, {transform_indices = @transform_1, window_bounds = array<i64: 16, 128>}, {transform_indices = @transform_2, window_bounds = array<i64: 8, 128>}]} {
    %c0_i32 = arith.constant 0 : i32
    %0 = arith.cmpi eq, %arg1, %c0_i32 : i32
    %1 = arith.extui %0 : i1 to i32
    %c0_i32_0 = arith.constant 0 : i32
    %2 = arith.cmpi ne, %1, %c0_i32_0 : i32
    scf.if %2 {
      %cst_14 = arith.constant 0.000000e+00 : f32
      %29 = vector.broadcast %cst_14 : f32 to vector<8x128xf32>
      %c0_15 = arith.constant 0 : index
      %c0_16 = arith.constant 0 : index
      %30 = vector.load %arg4[%c0_15, %c0_16] : memref<8x128xf32, #tpu.memory_space<vmem>>, vector<8x128xf32>
      tpu.vector_store %arg4[%c0_15, %c0_16], %29 {strides = array<i32>} : memref<8x128xf32, #tpu.memory_space<vmem>>, vector<8x128xf32>,
    } else {
    }
    %c0 = arith.constant 0 : index
    %c0_1 = arith.constant 0 : index
    %3 = vector.load %arg2[%c0, %c0_1] : memref<16x128xf32, #tpu.memory_space<vmem>>, vector<16x128xf32>
    %c0_2 = arith.constant 0 : index
    %c0_3 = arith.constant 0 : index
    %4 = vector.load %arg3[%c0_2, %c0_3] : memref<16x128xf32, #tpu.memory_space<vmem>>, vector<16x128xf32>
    %cst = arith.constant 1.130000e+00 : f32
    %5 = vector.broadcast %cst : f32 to vector<16x128xf32>
    %6 = arith.mulf %5, %4 : vector<16x128xf32>
    %cst_4 = arith.constant 1.000000e+00 : f32
    %7 = vector.broadcast %cst_4 : f32 to vector<16x128xf32>
    %8 = arith.addf %7, %6 : vector<16x128xf32>
    %cst_5 = arith.constant 0.000000e+00 : f32
    %9 = vector.broadcast %cst_5 : f32 to vector<16x128xf32>
    %10 = arith.subf %9, %3 : vector<16x128xf32>
    %cst_6 = arith.constant 0.000000e+00 : f32
    %11 = vector.broadcast %cst_6 : f32 to vector<16x128xf32>
    %12 = arith.maximumf %10, %11 : vector<16x128xf32>
    %13 = math.absf %3 : vector<16x128xf32>
    %cst_7 = arith.constant 0.000000e+00 : f32
    %14 = vector.broadcast %cst_7 : f32 to vector<16x128xf32>
    %15 = arith.subf %14, %13 : vector<16x128xf32>
    %16 = math.exp %15 : vector<16x128xf32>
    %17 = math.log1p %16 : vector<16x128xf32>
    %18 = arith.addf %12, %17 : vector<16x128xf32>
    %cst_8 = arith.constant 1.000000e+00 : f32
    %19 = vector.broadcast %cst_8 : f32 to vector<16x128xf32>
    %20 = arith.subf %19, %4 : vector<16x128xf32>
    %21 = arith.mulf %20, %3 : vector<16x128xf32>
    %22 = arith.mulf %8, %18 : vector<16x128xf32>
    %23 = arith.addf %21, %22 : vector<16x128xf32>
    %c0_9 = arith.constant 0 : index
    %c0_10 = arith.constant 0 : index
    %24 = vector.load %arg4[%c0_9, %c0_10] : memref<8x128xf32, #tpu.memory_space<vmem>>, vector<8x128xf32>
    %25 = vector.shape_cast %23 : vector<16x128xf32> to vector<2x8x128xf32>
    %cst_11 = arith.constant dense<0.000000e+00> : vector<8x128xf32>
    %26 = vector.multi_reduction <add>, %25, %cst_11 [0] : vector<2x8x128xf32> to vector<8x128xf32>
    %27 = arith.addf %24, %26 : vector<8x128xf32>
    %c0_12 = arith.constant 0 : index
    %c0_13 = arith.constant 0 : index
    %28 = vector.load %arg4[%c0_12, %c0_13] : memref<8x128xf32, #tpu.memory_space<vmem>>, vector<8x128xf32>
    tpu.vector_store %arg4[%c0_12, %c0_13], %27 {strides = array<i32>} : memref<8x128xf32, #tpu.memory_space<vmem>>, vector<8x128xf32>,
    return
  }
  func.func @transform_0(%arg0: i32, %arg1: i32) -> (i32, i32) {
    %c1_i32 = arith.constant 1 : i32
    %0 = arith.muli %arg0, %c1_i32 : i32
    %1 = arith.addi %0, %arg1 : i32
    %c0_i32 = arith.constant 0 : i32
    %c0_i32_0 = arith.constant 0 : i32
    return %1, %c0_i32 : i32, i32
  }
  func.func @transform_1(%arg0: i32, %arg1: i32) -> (i32, i32) {
    %c1_i32 = arith.constant 1 : i32
    %0 = arith.muli %arg0, %c1_i32 : i32
    %1 = arith.addi %0, %arg1 : i32
    %c0_i32 = arith.constant 0 : i32
    %c0_i32_0 = arith.constant 0 : i32
    return %1, %c0_i32 : i32, i32
  }
  func.func @transform_2(%arg0: i32, %arg1: i32) -> (i32, i32) {
    %c0_i32 = arith.constant 0 : i32
    %c0_i32_0 = arith.constant 0 : i32
    return %arg0, %c0_i32 : i32, i32
  }
}

</mosaic_0001>

<bundles_post_ra>
// kernel: tpu_custom_call.1
= control target key start
LH: loop header
LB: loop body
LE: loop exit
PB: predicated region body
PF: predicated region fallthrough
CT: control target
= control target key end

     0   :  { %7 = vsyncpa [#allocation3], 0  ;;  %s267_s0 = inlined_call_operand.hbm [shape: f32[16,128], index: 0, kind: input, shape index: {}]   ;;  %s268_s1 = inlined_call_operand.hbm [shape: f32[16,128], index: 1, kind: input, shape index: {}]   ;;  %s269_s2 = inlined_call_operand.hbm [shape: f32[8,128], index: 2, kind: output, shape index: {}]  }
   0x1   :  { %8 = vsyncpa [#allocation6], 0 }
   0x2   :  { %9 = vsyncpa [#allocation4], 0  ;;  %s211_s9 = smov [#allocation2]   ;;  %s139_s13 = scalar_lea.hbm %s267_s0, 256 }
   0x3   :  { %s19_s10 = sshll.u32 %s211_s9, 4  ;;  %p140_p0 = scmp.ne.s32.totalorder %s267_s0, %s139_s13  ;;  %s20_s10 = int_to_ptr.vmem [resolvable:$true] %s19_s10 }
   0x4   :  { %p143_p1 = scmp.lt.u32.totalorder %s139_s13, %s267_s0 }
   0x6   :  { %p145_p2 = pnand %p143_p1, %p140_p0 }
   0x8   :  { %148 = shalt.err (!%p145_p2)
}
   0x9   :  { %s149_s18 = scalar_lea.vmem %s20_s10, 256  ;;  %p154_p4 = scmp.lt.s32.totalorder %s20_s10, %s20_s10 }
   0xa   :  { %p150_p3 = scmp.ne.s32.totalorder %s20_s10, %s149_s18  ;;  %p155_p5 = scmp.lt.s32.totalorder %s149_s18, %s149_s18 }
   0xc   :  { %p156_p6 = por %p155_p5, %p154_p4 }
   0xe   :  { %p157_p7 = pnand %p156_p6, %p150_p3 }
  0x10   :  { %160 = shalt.err (!%p157_p7)
}
  0x11   :  { %s212_s19 = smov 128   ;;  %s213_s20 = smov 8  }
  0x12   :  { %25 = dma.hbm_to_vmem [thread:$0]  %s267_s0, 256, %s20_s10, [#allocation3], %s212_s19, %s212_s19, %s213_s20  }
  0x13   :  { %s214_s23 = smov [#allocation5]   ;;  %s161_s27 = scalar_lea.hbm %s268_s1, 256 }
  0x14   :  { %s35_s24 = sshll.u32 %s214_s23, 4  ;;  %p162_p8 = scmp.ne.s32.totalorder %s268_s1, %s161_s27  ;;  %s36_s24 = int_to_ptr.vmem [resolvable:$true] %s35_s24 }
  0x15   :  { %p165_p9 = scmp.lt.u32.totalorder %s161_s27, %s268_s1 }
  0x17   :  { %p167_p10 = pnand %p165_p9, %p162_p8 }
  0x19   :  { %170 = shalt.err (!%p167_p10)
}
  0x1a   :  { %s171_s4 = scalar_lea.vmem %s36_s24, 256  ;;  %p176_p12 = scmp.lt.s32.totalorder %s36_s24, %s36_s24 }
  0x1b   :  { %p172_p11 = scmp.ne.s32.totalorder %s36_s24, %s171_s4  ;;  %p177_p13 = scmp.lt.s32.totalorder %s171_s4, %s171_s4 }
  0x1d   :  { %p178_p0 = por %p177_p13, %p176_p12 }
  0x1f   :  { %p179_p1 = pnand %p178_p0, %p172_p11 }
  0x21   :  { %182 = shalt.err (!%p179_p1)
}
  0x22   :  { %41 = dma.hbm_to_vmem [thread:$0]  %s268_s1, 256, %s36_s24, [#allocation6], %s212_s19, %s212_s19, %s213_s20  }
  0x23   :  { %205 = dma.done.wait [#allocation3], 256  }
  0x24   :  { %206 = vsyncadd [#allocation3], 4294967040 }
  0x25   :  { %207 = dma.done.wait [#allocation6], 256  }
  0x26   :  { %208 = vsyncadd [#allocation6], 4294967040  ;;  %v57_v0 = vld [vmem:[#allocation2] sm:$0xff]  ;;  %v58_v1 = vld [vmem:[#allocation2 + $0x8] sm:$0xff]  ;;  %s215_s1 = smov [#allocation7]  }
  0x27   :  { %v69_v2 = vand.u32 2147483647, %v57_v0  ;;  %v70_v3 = vand.u32 2147483647, %v58_v1  ;;  %v59_v14 = vld [vmem:[#allocation5] sm:$0xff]  ;;  %v60_v16 = vld [vmem:[#allocation5 + $0x8] sm:$0xff] }
  0x28   :  { %v65_v17 = vsub.f32 0.0, %v57_v0  ;;  %v66_v20 = vsub.f32 0.0, %v58_v1  ;;  %v61_v22 = vmul.f32 1.13, %v59_v14  ;;  %v62_v23 = vmul.f32 1.13, %v60_v16 }
  0x29   :  { %v71_v4 = vsub.f32 0.0, %v69_v2  ;;  %v72_v5 = vsub.f32 0.0, %v70_v3  ;;  %v97_v28 = vsub.f32 1.0, %v59_v14  ;;  %v98_v32 = vsub.f32 1.0, %v60_v16  ;;  %s115_s6 = sshll.u32 %s215_s1, 4  ;;  %s116_s6 = int_to_ptr.vmem [resolvable:$true] %s115_s6 }
  0x2a   :  { %v67_v26 = vmax.f32 %v65_v17, 0.0  ;;  %v68_v30 = vmax.f32 %v66_v20, 0.0  ;;  %v63_v33 = vadd.f32 1.0, %v61_v22  ;;  %v64_v35 = vadd.f32 1.0, %v62_v23  ;;  %s183_s7 = scalar_lea.vmem %s116_s6, 128  ;;  %p188_p3 = scmp.lt.s32.totalorder %s116_s6, %s116_s6 }
  0x2b   :  { %v73_v6 = vmul.f32 1.442695, %v71_v4  ;;  %v75_v7 = vmul.f32 1.442695, %v72_v5  ;;  %v99_v39 = vmul.f32 %v97_v28, %v57_v0  ;;  %v100_v41 = vmul.f32 %v98_v32, %v58_v1  ;;  %p184_p2 = scmp.ne.s32.totalorder %s116_s6, %s183_s7  ;;  %p189_p4 = scmp.lt.s32.totalorder %s183_s7, %s183_s7 }
  0x2d   :  { %131 = vpow2.f32 %v73_v6  ;;  %p190_p5 = por %p189_p4, %p188_p3 }
  0x2e   :  { %133 = vpow2.f32 %v75_v7 }
  0x2f   :  { %p191_p6 = pnand %p190_p5, %p184_p2 }
  0x37   :  { %v132_v8 = vpop.eup %131 }
  0x38   :  { %v134_v9 = vpop.eup %133  ;;  %v77_v10 = vadd.f32 1.0, %v132_v8  ;;  %v80_v12 = vmul.f32 -0.5, %v132_v8  ;;  %v83_v18 = vand.u32 2147483647, %v132_v8 }
  0x39   :  { %v86_v11 = vadd.f32 1.0, %v134_v9  ;;  %v89_v13 = vmul.f32 -0.5, %v134_v9  ;;  %v92_v21 = vand.u32 2147483647, %v134_v9 }
  0x3a   :  { %135 = vlog2.f32 %v77_v10  ;;  %v81_v15 = vadd.f32 1.0, %v80_v12  ;;  %vm84_vm0 = vcmp.lt.f32.partialorder %v83_v18, 0.0004427343 }
  0x3b   :  { %137 = vlog2.f32 %v86_v11  ;;  %v90_v19 = vadd.f32 1.0, %v89_v13  ;;  %vm93_vm1 = vcmp.lt.f32.partialorder %v92_v21, 0.0004427343 }
  0x3c   :  { %v82_v24 = vmul.f32 %v132_v8, %v81_v15 }
  0x3d   :  { %v91_v27 = vmul.f32 %v134_v9, %v90_v19 }
  0x44   :  { %v136_v25 = vpop.eup %135 }
  0x45   :  { %v138_v29 = vpop.eup %137  ;;  %v79_v31 = vmul.f32 0.6931472, %v136_v25 }
  0x46   :  { %v88_v34 = vmul.f32 0.6931472, %v138_v29 }
  0x47   :  { %v85_v36 = vsel %vm84_vm0, %v82_v24, %v79_v31 }
  0x48   :  { %v94_v37 = vsel %vm93_vm1, %v91_v27, %v88_v34  ;;  %v95_v38 = vadd.f32 %v85_v36, %v67_v26 }
  0x49   :  { %v96_v40 = vadd.f32 %v94_v37, %v68_v30 }
  0x4a   :  { %v101_v42 = vmul.f32 %v95_v38, %v63_v33 }
  0x4b   :  { %v102_v43 = vmul.f32 %v96_v40, %v64_v35 }
  0x4c   :  { %v103_v44 = vadd.f32 %v101_v42, %v99_v39 }
  0x4d   :  { %v104_v45 = vadd.f32 %v102_v43, %v100_v41 }
  0x4f   :  { %v106_v46 = vadd.f32 %v104_v45, %v103_v44 }
  0x51   :  { %108 = vst [vmem:[#allocation7] sm:$0xff] %v106_v46 }
  0x52   :  { %194 = shalt.err (!%p191_p6)
}
  0x53   :  { %s195_s10 = scalar_lea.hbm %s269_s2, 128 }
  0x54   :  { %p196_p7 = scmp.ne.s32.totalorder %s269_s2, %s195_s10  ;;  %p199_p8 = scmp.lt.u32.totalorder %s195_s10, %s269_s2 }
  0x56   :  { %p201_p9 = pnand %p199_p8, %p196_p7 }
  0x58   :  { %204 = shalt.err (!%p201_p9)
}
  0x59   :  { %118 = dma.vmem_to_hbm [thread:$0]  %s116_s6, 128, %s269_s2, [#allocation4]  }
  0x5a   :  { %209 = dma.done.wait [#allocation4], 128  }
  0x5b   :  { %210 = vsyncadd [#allocation4], 4294967168 }
  0x5c   :  { %122 = vsyncpa [#allocation3], 1 }
  0x5d   :  { %123 = vsyncpa [#allocation6], 1 }
  0x5e   :  { %124 = vsyncpa [#allocation4], 1 }

</bundles_post_ra>
